<compile_context>
chip_gen: v6e
topology: v6e:2x2x1
jax: 0.10.0
libtpu: 0.0.40
codegen_flags: <defaults>
</compile_context>

<pallas_src>
import math
import numpy as np
import jax
import jax.numpy as jnp
from jax.experimental import pallas as pl
from jax.experimental.pallas import tpu as pltpu


# ---------------------------------------------------------------------------
# Parameter / index setup (mirrors ifft_layer.__init__)
# ---------------------------------------------------------------------------
def build_indices(dim, K, pfield):
    pf = 2
    pfield = list(pfield) if len(pfield) > 1 else list(pfield) * dim
    pfield_ = list(np.array(pfield) * pf)
    pfield_[-1] = pfield_[-1] // 2 + 1
    indx = []
    for k1 in range(min(pfield_[0], K + 1)):
        for k2 in range(min(pfield_[1], K + 1)):
            if dim == 2:
                if k1 + k2 <= K:
                    indx.append(k1 * pfield_[1] + k2)
            else:
                for k3 in range(min(pfield_[2], K + 1)):
                    if k1 + k2 + k3 <= K:
                        indx.append((k1 * pfield_[1] + k2) * pfield_[2] + k3)
    return indx, pfield, pfield_


def build_basis(dim, indx, n_coeffs, pfield, pfield_):
    """Real-valued basis (float64, 1/sqrt(n_coeffs) folded in):
         row j            = crop(irfftn(real impulse at indx[j])) / sqrt(n_coeffs)
         row n_coeffs + j = crop(irfftn(imag impulse at indx[j])) / sqrt(n_coeffs)
    """
    half_shape = tuple(pfield_)                      # e.g. (16, 9) for pfield=[8,8]
    full_sizes = list(pfield_)
    full_sizes[-1] = 2 * (pfield_[-1] - 1)           # irfft output sizes
    P = int(np.prod(pfield))

    Ti = np.zeros((2 * n_coeffs,) + half_shape, dtype=np.complex128)
    flat = Ti.reshape(2 * n_coeffs, -1)
    for j, idx in enumerate(indx):
        flat[j, idx] = 1.0 + 0.0j                    # real-part impulse
        flat[n_coeffs + j, idx] = 0.0 + 1.0j         # imag-part impulse

    axes = tuple(range(1, 1 + dim))
    y = np.fft.irfftn(Ti, s=full_sizes, axes=axes, norm="forward")
    if dim == 2:
        y = y[:, : pfield[0], : pfield[1]]
    else:
        y = y[:, : pfield[0], : pfield[1], : pfield[2]]
    return y.reshape(2 * n_coeffs, P) / math.sqrt(n_coeffs)     # float64


def pack_factor(P, Kdim, max_pp=512):
    """Choose the number of logical output rows packed per physical row.

    Requires (pack * P) % 128 == 0 (lane-dense output stores), then scales pack
    up so pack * Kdim fills up to ~128 contraction lanes (lane-dense LHS), while
    keeping the packed output width <= max_pp lanes."""
    base = 128 // math.gcd(P, 128)
    if base * P > max_pp:
        return 1
    mult = max(1, 128 // (base * Kdim))
    while mult > 1 and base * mult * P > max_pp:
        mult -= 1
    return base * mult


def build_packed_basis(basis_f64, pack, dtype=jnp.float32):
    """Block-diagonal packing: (Kdim, P) -> (pack*Kdim, pack*P)."""
    Kdim, P = basis_f64.shape
    bd = np.zeros((pack * Kdim, pack * P), dtype=np.float64)
    for k in range(pack):
        bd[k * Kdim:(k + 1) * Kdim, k * P:(k + 1) * P] = basis_f64
    return jnp.asarray(bd, dtype=dtype)


def make_ifft_layer(dim, K, pfield):
    indx, pfield, pfield_ = build_indices(dim, K, pfield)
    n_coeffs = len(indx)
    P = int(np.prod(pfield))
    basis_f64 = build_basis(dim, indx, n_coeffs, pfield, pfield_)     # (2n, P)
    pack = pack_factor(P, 2 * n_coeffs)
    return {
        "n_coeffs": n_coeffs,
        "pfield": tuple(pfield),
        "pack": pack,
        "basis_f64": basis_f64,
        "basis": jnp.asarray(basis_f64, dtype=jnp.float32),            # fallback path
        "basis_packed": build_packed_basis(basis_f64, pack),           # (pack*2n, pack*P)
    }


# ---------------------------------------------------------------------------
# Pallas kernel: hot path = (TM, pack*Kdim) @ (pack*Kdim, pack*P)
# ---------------------------------------------------------------------------
def _matmul_kernel(x_ref, b_ref, o_ref):
    o_ref[...] = jnp.dot(
        x_ref[...], b_ref[...], preferred_element_type=jnp.float32
    ).astype(o_ref.dtype)


def _round_up(a, b):
    return ((a + b - 1) // b) * b


def _choose_tm(mh, kp, pp, in_itemsize, out_itemsize,
               vmem_budget_bytes=12 * 1024 * 1024):
    """Largest M-tile (capped at 2048) whose double-buffered input+output
    footprint stays under a conservative VMEM budget (sized against the
    tightest chip: v5e's 16 MiB default scoped VMEM / v7x's 64 MiB physical).
    No artificial halving just to create multiple grid steps."""
    # Sub-32-bit tiles want a 16-row sublane granule; 16 is also fine for f32.
    min_tm = 16 if (in_itemsize < 4 or out_itemsize < 4) else 8
    tm = min(2048, _round_up(mh, min_tm))
    per_row = 2 * (kp * in_itemsize + pp * out_itemsize)     # double-buffered
    while tm > min_tm and tm * per_row > vmem_budget_bytes:
        tm = _round_up(tm // 2, min_tm)
    return max(tm, min_tm)


def ifft_layer_forward(params, x, *, out_dtype=jnp.float32, tm=None,
                       min_rows_for_pallas=2048):
    """y = ifft_layer(x), linearized as a matmul against the precomputed basis."""
    n_coeffs = params["n_coeffs"]
    pfield = params["pfield"]
    pack = params["pack"]
    Kdim = 2 * n_coeffs
    P = int(np.prod(pfield))

    Bsz = x.shape[0]
    trailing = int(np.prod(x.shape[1:]))
    assert trailing % Kdim == 0, "trailing dims must be a multiple of 2*n_coeffs"
    C = trailing // Kdim
    M = Bsz * C
    out_shape = (Bsz, C) + tuple(pfield)

    x2 = x.reshape(M, Kdim)

    # Tiny problems: a single-step Pallas launch (fixed DMA-setup / prologue /
    # epilogue cost) loses to XLA's fused dot on every TPU generation.
    if M < min_rows_for_pallas:
        y = jnp.dot(x2, params["basis"].astype(x2.dtype),
                    preferred_element_type=jnp.float32)
        return y.astype(out_dtype).reshape(out_shape)

    # Pack `pack` consecutive logical rows per physical row.  Only the
    # <= (pack-1)-row remainder is padded; the merge itself is a pure reshape
    # of contiguous memory (no extra HBM pass).
    if M % pack:
        x2 = jnp.pad(x2, ((0, pack - M % pack), (0, 0)))
    Mh = x2.shape[0] // pack
    Kp, Pp = pack * Kdim, pack * P
    x_packed = x2.reshape(Mh, Kp)

    bp = params["basis_packed"]
    in_isz = np.dtype(x_packed.dtype).itemsize
    out_isz = np.dtype(out_dtype).itemsize
    TM = tm if tm is not None else _choose_tm(Mh, Kp, Pp, in_isz, out_isz)
    grid_m = pl.cdiv(Mh, TM)        # partial trailing block is masked by Pallas

    cost = pl.CostEstimate(
        flops=2 * Mh * Kp * Pp,
        transcendentals=0,
        bytes_accessed=(in_isz * Mh * Kp
                        + np.dtype(bp.dtype).itemsize * Kp * Pp
                        + out_isz * Mh * Pp),
    )

    out = pl.pallas_call(
        _matmul_kernel,
        out_shape=jax.ShapeDtypeStruct((Mh, Pp), out_dtype),
        grid_spec=pltpu.PrefetchScalarGridSpec(
            num_scalar_prefetch=0,
            grid=(grid_m,),
            in_specs=[
                pl.BlockSpec((TM, Kp), lambda i: (i, 0)),
                # Constant (0, 0) block index: Pallas skips the re-fetch across
                # grid steps, so the basis is DMA'd from HBM exactly once.
                pl.BlockSpec((Kp, Pp), lambda i: (0, 0)),
            ],
            out_specs=pl.BlockSpec((TM, Pp), lambda i: (i, 0)),
        ),
        compiler_params=pltpu.CompilerParams(
            dimension_semantics=("parallel",),      # megacore sharding on v7x
            vmem_limit_bytes=32 * 1024 * 1024,
        ),
        cost_estimate=cost,
    )(x_packed, bp)

    # Unpack lanes back to logical rows; crop the padded remainder (and any rows
    # produced from the masked partial trailing block).
    y = out.reshape(Mh * pack, P)[:M]
    return y.reshape(out_shape)


# ---------------------------------------------------------------------------
if __name__ == "__main__":
    # Module config: dim=2, K=3, pfield=[8, 8]  ->  n_coeffs = 10, 2*n_coeffs = 20
    dim, K, pfield_in = 2, 3, [8, 8]
    params = make_ifft_layer(dim, K, pfield_in)
    n_coeffs, pfield = params["n_coeffs"], params["pfield"]
    basis_f64 = params["basis_f64"]
    Kdim = 2 * n_coeffs

    key = jax.random.PRNGKey(0)
    k1, k2 = jax.random.split(key)

    def reference(x_arr, B, C):
        xf = np.asarray(x_arr, dtype=np.float64).reshape(B * C, Kdim)
        return (xf @ basis_f64).reshape((B, C) + tuple(pfield))

    # ---- Small shape consistent with the module: x [B=2, C=4, 2*n_coeffs=20] ----
    B, C = 2, 4
    x_small = jax.random.normal(k1, (B, C, Kdim), dtype=jnp.float32)
    ref_small = reference(x_small, B, C)

    # Default path (small M -> plain XLA dot fallback).
    y_small = jax.block_until_ready(ifft_layer_forward(params, x_small))
    np.testing.assert_allclose(np.asarray(y_small), ref_small, rtol=1e-4, atol=1e-4)

    # Forced Pallas path at the same small shape (exercises remainder padding and
    # the masked partial block).
    y_small_pl = jax.block_until_ready(
        ifft_layer_forward(params, x_small, min_rows_for_pallas=0))
    np.testing.assert_allclose(np.asarray(y_small_pl), ref_small, rtol=1e-4, atol=1e-4)
    assert y_small_pl.shape == (B, C, pfield[0], pfield[1])

    # ---- Moderate shape: multi-step grid, partial trailing M block, f32 output ----
    B2, C2 = 2, 960                       # M = 1920 logical rows -> Mh = 320 packed
    x_med = jax.random.normal(k2, (B2, C2, Kdim), dtype=jnp.float32)
    ref_med = reference(x_med, B2, C2)
    y_med = jax.block_until_ready(
        ifft_layer_forward(params, x_med, min_rows_for_pallas=0, tm=128))
    np.testing.assert_allclose(np.asarray(y_med), ref_med, rtol=1e-4, atol=1e-4)

    # ---- bf16-output path (output writes dominate HBM traffic; f32 accumulation) ----
    y_bf16 = jax.block_until_ready(
        ifft_layer_forward(params, x_med, out_dtype=jnp.bfloat16,
                           min_rows_for_pallas=0, tm=128))
    tol = 1.0e-2 * float(np.max(np.abs(ref_med))) + 1e-3
    np.testing.assert_allclose(np.asarray(y_bf16).astype(np.float64), ref_med,
                               rtol=0.0, atol=tol)

    print("KERNEL_OK")
</pallas_src>

<mosaic_0001>
module attributes {stable_mosaic.version = 11 : i64} {
  func.func @_matmul_kernel(%arg0: i32, %arg1: memref<8x120xf32, #tpu.memory_space<vmem>>, %arg2: memref<120x384xf32, #tpu.memory_space<vmem>>, %arg3: memref<8x384xf32, #tpu.memory_space<vmem>>) attributes {dimension_semantics = [#tpu.dimension_semantics<parallel>], iteration_bounds = array<i64: 1>, scalar_prefetch = 0 : i64, scratch_operands = 0 : i64, tpu.core_type = #tpu.core_type<tc>, window_params = [{transform_indices = @transform_0, window_bounds = array<i64: 8, 120>}, {pipeline_mode = #tpu.pipeline_mode<synchronous>, transform_indices = @transform_1, window_bounds = array<i64: 120, 384>}, {transform_indices = @transform_2, window_bounds = array<i64: 8, 384>}]} {
    %c0 = arith.constant 0 : index
    %c0_0 = arith.constant 0 : index
    %0 = vector.load %arg1[%c0, %c0_0] : memref<8x120xf32, #tpu.memory_space<vmem>>, vector<8x120xf32>
    %c0_1 = arith.constant 0 : index
    %c0_2 = arith.constant 0 : index
    %1 = vector.load %arg2[%c0_1, %c0_2] : memref<120x384xf32, #tpu.memory_space<vmem>>, vector<120x384xf32>
    %cst = arith.constant dense<0.000000e+00> : vector<8x384xf32>
    %2 = tpu.matmul %0, %1, %cst {dimension_numbers = #tpu.dot_dimension_numbers<[1], [0], [0], [1], [0, 0, 1, 1], [], []>} : vector<8x120xf32>, vector<120x384xf32>, vector<8x384xf32> -> vector<8x384xf32>
    %c0_3 = arith.constant 0 : index
    %c0_4 = arith.constant 0 : index
    %3 = vector.load %arg3[%c0_3, %c0_4] : memref<8x384xf32, #tpu.memory_space<vmem>>, vector<8x384xf32>
    tpu.vector_store %arg3[%c0_3, %c0_4], %2 {strides = array<i32>} : memref<8x384xf32, #tpu.memory_space<vmem>>, vector<8x384xf32>,
    return
  }
  func.func @transform_0(%arg0: i32) -> (i32, i32) {
    %c0_i32 = arith.constant 0 : i32
    %c0_i32_0 = arith.constant 0 : i32
    return %arg0, %c0_i32 : i32, i32
  }
  func.func @transform_1(%arg0: i32) -> (i32, i32) {
    %c0_i32 = arith.constant 0 : i32
    %c0_i32_0 = arith.constant 0 : i32
    %c0_i32_1 = arith.constant 0 : i32
    return %c0_i32, %c0_i32_0 : i32, i32
  }
  func.func @transform_2(%arg0: i32) -> (i32, i32) {
    %c0_i32 = arith.constant 0 : i32
    %c0_i32_0 = arith.constant 0 : i32
    return %arg0, %c0_i32 : i32, i32
  }
}

</mosaic_0001>

<bundles_post_ra>
// kernel: tpu_custom_call.1
= control target key start
LH: loop header
LB: loop body
LE: loop exit
PB: predicated region body
PF: predicated region fallthrough
CT: control target
= control target key end

     0   :  { %7 = vsyncpa [#allocation3], 0  ;;  %s477_s0 = inlined_call_operand.hbm [shape: f32[2,120], index: 0, kind: input, shape index: {}]   ;;  %s478_s1 = inlined_call_operand.hbm [shape: f32[120,384], index: 1, kind: input, shape index: {}]   ;;  %s479_s2 = inlined_call_operand.hbm [shape: f32[2,384], index: 2, kind: output, shape index: {}]  }
   0x1   :  { %8 = vsyncpa [#allocation6], 0 }
   0x2   :  { %9 = vsyncpa [#allocation4], 0 }
   0x3   :  { %14 = vsyncadd [#allocation3], 96  ;;  %s424_s9 = smov [#allocation2]  }
   0x4   :  { %s15_s10 = sshll.u32 %s424_s9, 4  ;;  %s16_s10 = int_to_ptr.vmem [resolvable:$true] %s15_s10 }
   0x5   :  { %s366_s11 = scalar_lea.vmem %s16_s10, 32  ;;  %s370_s12 = scalar_lea.vmem %s16_s10, 128 }
   0x6   :  { %p367_p0 = scmp.ne.s32.totalorder %s16_s10, %s366_s11  ;;  %p371_p1 = scmp.lt.s32.totalorder %s16_s10, %s16_s10 }
   0x7   :  { %p372_p2 = scmp.lt.s32.totalorder %s370_s12, %s366_s11 }
   0x9   :  { %p373_p3 = por %p372_p2, %p371_p1 }
   0xb   :  { %p374_p4 = pnand %p373_p3, %p367_p0 }
   0xd   :  { %377 = shalt.err (!%p374_p4)
}
   0xe   :  { %s425_s13 = smov 32   ;;  %s426_s14 = smov 2  }
   0xf   :  { %21 = dma.hbm_to_vmem [thread:$0]  %s477_s0, 32, %s16_s10, [#allocation3], %s425_s13, %s425_s13, %s426_s14  }
  0x10   :  { %s427_s17 = smov [#allocation5]  }
  0x11   :  { %s27_s18 = sshll.u32 %s427_s17, 4  ;;  %s28_s18 = int_to_ptr.vmem [resolvable:$true] %s27_s18 }
  0x12   :  { %s386_s19 = scalar_lea.vmem %s28_s18, 5760  ;;  %p391_p6 = scmp.lt.s32.totalorder %s28_s18, %s28_s18 }
  0x13   :  { %p387_p5 = scmp.ne.s32.totalorder %s28_s18, %s386_s19  ;;  %p392_p7 = scmp.lt.s32.totalorder %s386_s19, %s386_s19 }
  0x15   :  { %p393_p8 = por %p392_p7, %p391_p6 }
  0x17   :  { %p394_p9 = pnand %p393_p8, %p387_p5 }
  0x19   :  { %397 = shalt.err (!%p394_p9)
}
  0x1a   :  { %s428_s20 = smov 384   ;;  %s429_s21 = smov 24  }
  0x1b   :  { %33 = dma.hbm_to_vmem [thread:$0]  %s478_s1, 5760, %s28_s18, [#allocation6], %s428_s20, %s428_s20, %s429_s21  }
  0x1c   :  { %418 = dma.done.wait [#allocation3], 128  }
  0x1d   :  { %419 = vsyncadd [#allocation3], 4294967168 }
  0x1e   :  { %420 = dma.done.wait [#allocation6], 5760  }
  0x1f   :  { %421 = vsyncadd [#allocation6], 4294961536  ;;  %v430_v0 = vmov 0.0   ;;  %vm431_vm0 = vmmov 0   ;;  %v84_v1 = vld [vmem:[#allocation5 + $0x158] sm:$0xff]  ;;  %v83_v2 = vld [vmem:[#allocation5 + $0x150] sm:$0xff]  ;;  %v240_v49 = vlaneseq }
  0x20   :  { %313 = vmatprep.subr.mxu1 %v430_v0  ;;  %154 = vmatprep.mubr.f32.mxu0 %v430_v0  ;;  %v85_v3 = vld [vmem:[#allocation5 + $0x160] sm:$0xff]  ;;  %v80_v5 = vld [vmem:[#allocation5 + $0x138] sm:$0xff]  ;;  %v82_v6 = vld [vmem:[#allocation5 + $0x148] sm:$0xff]  ;;  %vm86_vm1 = vcmask 982016   ;;  %v432_v47 = vmov 1983009808  }
  0x21   :  { %343 = vmatprep.mubr.msk.f32.mxu1 %vm431_vm0, %v430_v0  ;;  %92 = vmatprep.subr.mxu0 %v84_v1  ;;  %v81_v4 = vld [vmem:[#allocation5 + $0x140] sm:$0xff]  ;;  %v78_v7 = vld [vmem:[#allocation5 + $0x128] sm:$0xff]  ;;  %v79_v8 = vld [vmem:[#allocation5 + $0x130] sm:$0xff]  ;;  %v238_v48 = vunpack.c.l.s4 %v432_v47  ;;  %v241_v51 = vshrl.u32 %v240_v49, 7 }
  0x22   :  { %314 = vmatpush3.msra.mxu1 %v85_v3  ;;  %93 = vmatpush1.msra.mxu0 %v83_v2  ;;  %v77_v9 = vld [vmem:[#allocation5 + $0x120] sm:$0xff]  ;;  %v75_v10 = vld [vmem:[#allocation5 + $0x110] sm:$0xff]  ;;  %v76_v11 = vld [vmem:[#allocation5 + $0x118] sm:$0xff] }
  0x23   :  { %315 = vmatprep.subr.mxu1 %v430_v0  ;;  %94 = vmatprep.subr.mxu0 %v81_v4  ;;  %v74_v12 = vld [vmem:[#allocation5 + $0x108] sm:$0xff]  ;;  %v72_v13 = vld [vmem:[#allocation5 + $0xf8] sm:$0xff]  ;;  %v73_v14 = vld [vmem:[#allocation5 + $0x100] sm:$0xff]  ;;  %v239_v50 = vunpack.c.0.s8 %v238_v48 }
  0x24   :  { %316 = vmatpush3.msra.mxu1 %v82_v6  ;;  %95 = vmatpush1.msra.mxu0 %v80_v5  ;;  %v71_v15 = vld [vmem:[#allocation5 + $0xf0] sm:$0xff]  ;;  %v69_v16 = vld [vmem:[#allocation5 + $0xe0] sm:$0xff]  ;;  %v70_v17 = vld [vmem:[#allocation5 + $0xe8] sm:$0xff] }
  0x25   :  { %317 = vmatprep.subr.mxu1 %v430_v0  ;;  %96 = vmatprep.subr.mxu0 %v78_v7  ;;  %v68_v18 = vld [vmem:[#allocation5 + $0xd8] sm:$0xff]  ;;  %v66_v19 = vld [vmem:[#allocation5 + $0xc8] sm:$0xff]  ;;  %v67_v20 = vld [vmem:[#allocation5 + $0xd0] sm:$0xff]  ;;  %v242_v55 = vsub.s32 %v239_v50, %v241_v51 }
  0x26   :  { %318 = vmatpush3.msra.mxu1 %v79_v8  ;;  %97 = vmatpush1.msra.mxu0 %v77_v9  ;;  %v65_v21 = vld [vmem:[#allocation5 + $0xc0] sm:$0xff]  ;;  %v63_v22 = vld [vmem:[#allocation5 + $0xb0] sm:$0xff]  ;;  %v64_v23 = vld [vmem:[#allocation5 + $0xb8] sm:$0xff] }
  0x27   :  { %319 = vmatprep.subr.mxu1 %v430_v0  ;;  %98 = vmatprep.subr.mxu0 %v75_v10  ;;  %v62_v24 = vld [vmem:[#allocation5 + $0xa8] sm:$0xff]  ;;  %v60_v25 = vld [vmem:[#allocation5 + $0x98] sm:$0xff]  ;;  %v61_v26 = vld [vmem:[#allocation5 + $0xa0] sm:$0xff] }
  0x28   :  { %320 = vmatpush3.msra.mxu1 %v76_v11  ;;  %99 = vmatpush1.msra.mxu0 %v74_v12  ;;  %v59_v27 = vld [vmem:[#allocation5 + $0x90] sm:$0xff]  ;;  %v57_v28 = vld [vmem:[#allocation5 + $0x80] sm:$0xff]  ;;  %v58_v29 = vld [vmem:[#allocation5 + $0x88] sm:$0xff] }
  0x29   :  { %321 = vmatprep.subr.mxu1 %v430_v0  ;;  %100 = vmatprep.subr.mxu0 %v72_v13  ;;  %v56_v30 = vld [vmem:[#allocation5 + $0x78] sm:$0xff]  ;;  %v54_v31 = vld [vmem:[#allocation5 + $0x68] sm:$0xff]  ;;  %v55_v32 = vld [vmem:[#allocation5 + $0x70] sm:$0xff] }
  0x2a   :  { %322 = vmatpush3.msra.mxu1 %v73_v14  ;;  %101 = vmatpush1.msra.mxu0 %v71_v15  ;;  %v53_v33 = vld [vmem:[#allocation5 + $0x60] sm:$0xff]  ;;  %v51_v34 = vld [vmem:[#allocation5 + $0x50] sm:$0xff]  ;;  %v52_v35 = vld [vmem:[#allocation5 + $0x58] sm:$0xff] }
  0x2b   :  { %323 = vmatprep.subr.mxu1 %v430_v0  ;;  %102 = vmatprep.subr.mxu0 %v69_v16  ;;  %v50_v36 = vld [vmem:[#allocation5 + $0x48] sm:$0xff]  ;;  %v48_v37 = vld [vmem:[#allocation5 + $0x38] sm:$0xff]  ;;  %v49_v38 = vld [vmem:[#allocation5 + $0x40] sm:$0xff] }
  0x2c   :  { %324 = vmatpush3.msra.mxu1 %v70_v17  ;;  %103 = vmatpush1.msra.mxu0 %v68_v18  ;;  %v47_v39 = vld [vmem:[#allocation5 + $0x30] sm:$0xff]  ;;  %v45_v40 = vld [vmem:[#allocation5 + $0x20] sm:$0xff]  ;;  %v46_v41 = vld [vmem:[#allocation5 + $0x28] sm:$0xff] }
  0x2d   :  { %325 = vmatprep.subr.mxu1 %v430_v0  ;;  %104 = vmatprep.subr.mxu0 %v66_v19  ;;  %v44_v42 = vld [vmem:[#allocation5 + $0x18] sm:$0xff]  ;;  %v42_v43 = vld [vmem:[#allocation5 + $0x8] sm:$0xff]  ;;  %v43_v44 = vld [vmem:[#allocation5 + $0x10] sm:$0xff] }
  0x2e   :  { %326 = vmatpush3.msra.mxu1 %v67_v20  ;;  %105 = vmatpush1.msra.mxu0 %v65_v21  ;;  %v41_v45 = vld [vmem:[#allocation5] sm:$0xff]  ;;  %v40_v46 = vld [vmem:[#allocation2] sm:$0xff] }
  0x2f   :  { %327 = vmatprep.subr.mxu1 %v430_v0  ;;  %106 = vmatprep.subr.mxu0 %v63_v22 }
  0x30   :  { %328 = vmatpush3.msra.mxu1 %v64_v23  ;;  %107 = vmatpush1.msra.mxu0 %v62_v24 }
  0x31   :  { %329 = vmatprep.subr.mxu1 %v430_v0  ;;  %108 = vmatprep.subr.mxu0 %v60_v25 }
  0x32   :  { %330 = vmatpush3.msra.mxu1 %v61_v26  ;;  %109 = vmatpush1.msra.mxu0 %v59_v27 }
  0x33   :  { %331 = vmatprep.subr.mxu1 %v430_v0  ;;  %110 = vmatprep.subr.mxu0 %v57_v28 }
  0x34   :  { %332 = vmatpush3.msra.mxu1 %v58_v29  ;;  %111 = vmatpush1.msra.mxu0 %v56_v30 }
  0x35   :  { %333 = vmatprep.subr.mxu1 %v430_v0  ;;  %112 = vmatprep.subr.mxu0 %v54_v31 }
  0x36   :  { %334 = vmatpush3.msra.mxu1 %v55_v32  ;;  %113 = vmatpush1.msra.mxu0 %v53_v33 }
  0x37   :  { %335 = vmatprep.subr.mxu1 %v430_v0  ;;  %114 = vmatprep.subr.mxu0 %v51_v34 }
  0x38   :  { %336 = vmatpush3.msra.mxu1 %v52_v35  ;;  %115 = vmatpush1.msra.mxu0 %v50_v36 }
  0x39   :  { %337 = vmatprep.subr.mxu1 %v430_v0  ;;  %116 = vmatprep.subr.mxu0 %v48_v37 }
  0x3a   :  { %338 = vmatpush3.msra.mxu1 %v49_v38  ;;  %117 = vmatpush1.msra.mxu0 %v47_v39 }
  0x3b   :  { %339 = vmatprep.subr.mxu1 %v430_v0  ;;  %118 = vmatprep.subr.mxu0 %v45_v40 }
  0x3c   :  { %340 = vmatpush3.msra.mxu1 %v46_v41  ;;  %119 = vmatpush1.msra.mxu0 %v44_v42 }
  0x3d   :  { %341 = vmatprep.subr.mxu1 %v430_v0  ;;  %120 = vmatprep.subr.mxu0 %v42_v43 }
  0x3e   :  { %342 = vmatpush3.msra.mxu1 %v43_v44  ;;  %121 = vmatpush1.msra.mxu0 %v41_v45 }
  0x3f   :  { %344 = vmatmul.mubr.msk.f32.vlgmr.msra.gmra.mxu1 %vm86_vm1, %v40_v46  ;;  %295 = vmatmul.mubr.msk.f32.vlgmr.msra.gmra.mxu0 %vm86_vm1, %v40_v46 }
  0xff   :  { %v227_v52 = vpop.f32.mrf.mxu1  ;;  %v156_v53 = vpop.f32.mrf.mxu0 }
 0x100   :  { %v236_v54 = vcombine.high %v227_v52, %v227_v52  ;;  %v257_v61 = vrot.slane %v227_v52, %v242_v55 }
 0x101   :  { %v345_v56 = vpop.f32.mrf.mxu1  ;;  %v158_v57 = vpop.f32.mrf.mxu0 }
 0x102   :  { %v264_v58 = vrot.slane %v236_v54, %v242_v55  ;;  %v234_v59 = vcombine.low %v156_v53, %v158_v57  ;;  %v235_v60 = vcombine.high %v156_v53, %v158_v57 }
 0x104   :  { %v243_v62 = vrot.slane %v234_v59, %v242_v55  ;;  %v250_v63 = vrot.slane %v235_v60, %v242_v55 }
 0x106   :  { %v265_v0 = vcombine.low %v243_v62, %v257_v61  ;;  %v266_v1 = vcombine.high %v243_v62, %v257_v61  ;;  %v267_v2 = vcombine.low %v250_v63, %v264_v58  ;;  %v268_v3 = vcombine.high %v250_v63, %v264_v58 }
 0x108   :  { %273 = vst [vmem:[#allocation7] sm:$0x3f] %v265_v0  ;;  %274 = vst [vmem:[#allocation7 + $0x6] sm:$0x3f] %v266_v1 }
 0x109   :  { %275 = vst [vmem:[#allocation7 + $0xc] sm:$0x3f] %v267_v2  ;;  %276 = vst [vmem:[#allocation7 + $0x12] sm:$0x3f] %v268_v3 }
 0x10a   :  { %281 = vsyncadd [#allocation4], 288  ;;  %s433_s0 = smov [#allocation7]  }
 0x10b   :  { %s282_s1 = sshll.u32 %s433_s0, 4  ;;  %s283_s1 = int_to_ptr.vmem [resolvable:$true] %s282_s1 }
 0x10c   :  { %s398_s24 = scalar_lea.vmem %s283_s1, 96  ;;  %s402_s25 = scalar_lea.vmem %s283_s1, 384 }
 0x10d   :  { %p399_p10 = scmp.ne.s32.totalorder %s283_s1, %s398_s24  ;;  %p403_p11 = scmp.lt.s32.totalorder %s283_s1, %s283_s1 }
 0x10e   :  { %p404_p12 = scmp.lt.s32.totalorder %s402_s25, %s398_s24 }
 0x110   :  { %p405_p13 = por %p404_p12, %p403_p11 }
 0x112   :  { %p406_p0 = pnand %p405_p13, %p399_p10 }
 0x114   :  { %409 = shalt.err (!%p406_p0)
}
 0x115   :  { %s434_s26 = smov 96   ;;  %s435_s27 = smov 6  }
 0x116   :  { %288 = dma.vmem_to_hbm [thread:$0]  %s283_s1, 96, %s479_s2, [#allocation4], %s434_s26, %s434_s26, %s435_s27  }
 0x117   :  { %422 = dma.done.wait [#allocation4], 384  }
 0x118   :  { %423 = vsyncadd [#allocation4], 4294966912 }
 0x119   :  { %292 = vsyncpa [#allocation3], 1 }
 0x11a   :  { %293 = vsyncpa [#allocation6], 1 }
 0x11b   :  { %294 = vsyncpa [#allocation4], 1 }

</bundles_post_ra>
